<compile_context>
chip_gen: v7x
topology: tpu7x:2x2x1
jax: 0.10.0
libtpu: 0.0.40
codegen_flags: <defaults>
</compile_context>

<pallas_src>
import functools

import jax
import jax.numpy as jnp
from jax.experimental import pallas as pl
from jax.experimental.pallas import tpu as pltpu


def _sigmoid_range_kernel(x_ref, o_ref, *, low, high):
    # Elementwise: sigmoid(x) * (high - low) + low, computed in f32 for
    # accuracy, cast back to the output dtype. Memory-bound; EUP handles exp.
    x = x_ref[...].astype(jnp.float32)
    y = jax.nn.sigmoid(x) * (high - low) + low
    o_ref[...] = y.astype(o_ref.dtype)


def _round_up(x, m):
    return -(-x // m) * m


def sigmoid_range(x, low, high, *, target_block_bytes=2 * 1024 * 1024):
    """Elementwise sigmoid-range. Accepts any shape (e.g. NCHW)."""
    orig_shape = x.shape
    orig_dtype = x.dtype
    n_elem = x.size
    itemsize = jnp.dtype(orig_dtype).itemsize

    # Pad only up to the next multiple of 128 lanes (<= 127 dummy elements).
    padded_len = _round_up(n_elem, 128)

    # Widest lane width that divides the padded length -> lane-dense stores.
    for lanes in (1024, 512, 256, 128):
        if padded_len % lanes == 0:
            break
    rows = padded_len // lanes

    # ~2 MiB blocks amortize the ~0.35 us per-grid-step overhead while keeping
    # double-buffered input+output (4x block bytes) under every generation's
    # default scoped-VMEM limit (v5e: 16 MiB, v6e/v7x: 32 MiB).
    max_block_rows = max(8, (target_block_bytes // (lanes * itemsize)) // 8 * 8)
    if rows <= max_block_rows:
        block_rows = rows          # full-extent block dim: always legal
    else:
        block_rows = max_block_rows  # multiple of 8: ragged tail block is legal
    grid = (pl.cdiv(rows, block_rows),)

    x_flat = x.reshape(-1)
    if padded_len != n_elem:
        x_flat = jnp.pad(x_flat, (0, padded_len - n_elem))
    x2d = x_flat.reshape(rows, lanes)

    kernel = functools.partial(
        _sigmoid_range_kernel, low=float(low), high=float(high)
    )

    out2d = pl.pallas_call(
        kernel,
        out_shape=jax.ShapeDtypeStruct((rows, lanes), orig_dtype),
        grid_spec=pltpu.PrefetchScalarGridSpec(
            num_scalar_prefetch=0,
            grid=grid,
            in_specs=[pl.BlockSpec((block_rows, lanes), lambda i: (i, 0))],
            out_specs=pl.BlockSpec((block_rows, lanes), lambda i: (i, 0)),
        ),
        compiler_params=pltpu.CompilerParams(
            dimension_semantics=("parallel",)
        ),
    )(x2d)

    out_flat = out2d.reshape(padded_len)
    if padded_len != n_elem:
        out_flat = out_flat[:n_elem]
    return out_flat.reshape(orig_shape)


if __name__ == "__main__":
    key = jax.random.PRNGKey(0)
    # Small NCHW input consistent with a DynamicUnet head usage.
    x = jax.random.normal(key, (2, 4, 16, 16), dtype=jnp.float32)

    low, high = -1.0, 1.0  # deterministic module "parameters"
    out = jax.block_until_ready(sigmoid_range(x, low, high))

    # Reference check in plain JAX.
    ref = jax.nn.sigmoid(x) * (high - low) + low
    assert out.shape == x.shape and out.dtype == x.dtype
    assert jnp.allclose(out, ref, atol=1e-6, rtol=1e-6)

    # Also exercise the padded / ragged path (element count not multiple of 128).
    x2 = jax.random.normal(jax.random.PRNGKey(0), (3, 5, 7, 11), dtype=jnp.float32)
    out2 = jax.block_until_ready(sigmoid_range(x2, 2.0, 5.0))
    ref2 = jax.nn.sigmoid(x2) * (5.0 - 2.0) + 2.0
    assert out2.shape == x2.shape and out2.dtype == x2.dtype
    assert jnp.allclose(out2, ref2, atol=1e-6, rtol=1e-6)

    print("KERNEL_OK")
</pallas_src>

<mosaic_0001>
module attributes {stable_mosaic.version = 11 : i64} {
  func.func @_sigmoid_range_kernel(%arg0: i32, %arg1: memref<2x1024xf32, #tpu.memory_space<vmem>>, %arg2: memref<2x1024xf32, #tpu.memory_space<vmem>>) attributes {dimension_semantics = [#tpu.dimension_semantics<parallel>], iteration_bounds = array<i64: 1>, scalar_prefetch = 0 : i64, scratch_operands = 0 : i64, tpu.core_type = #tpu.core_type<tc>, window_params = [{transform_indices = @transform_0, window_bounds = array<i64: 2, 1024>}, {transform_indices = @transform_1, window_bounds = array<i64: 2, 1024>}]} {
    %c0 = arith.constant 0 : index
    %c0_0 = arith.constant 0 : index
    %0 = vector.load %arg1[%c0, %c0_0] : memref<2x1024xf32, #tpu.memory_space<vmem>>, vector<2x1024xf32>
    %1 = arith.negf %0 : vector<2x1024xf32>
    %2 = math.exp %1 : vector<2x1024xf32>
    %cst = arith.constant 1.000000e+00 : f32
    %3 = vector.broadcast %cst : f32 to vector<2x1024xf32>
    %4 = arith.addf %3, %2 : vector<2x1024xf32>
    %5 = arith.divf %3, %4 : vector<2x1024xf32>
    %cst_1 = arith.constant 2.000000e+00 : f32
    %6 = vector.broadcast %cst_1 : f32 to vector<2x1024xf32>
    %7 = arith.mulf %5, %6 : vector<2x1024xf32>
    %cst_2 = arith.constant -1.000000e+00 : f32
    %8 = vector.broadcast %cst_2 : f32 to vector<2x1024xf32>
    %9 = arith.addf %7, %8 : vector<2x1024xf32>
    %c0_3 = arith.constant 0 : index
    %c0_4 = arith.constant 0 : index
    %10 = vector.load %arg2[%c0_3, %c0_4] : memref<2x1024xf32, #tpu.memory_space<vmem>>, vector<2x1024xf32>
    tpu.vector_store %arg2[%c0_3, %c0_4], %9 {strides = array<i32>} : memref<2x1024xf32, #tpu.memory_space<vmem>>, vector<2x1024xf32>,
    return
  }
  func.func @transform_0(%arg0: i32) -> (i32, i32) {
    %c0_i32 = arith.constant 0 : i32
    %c0_i32_0 = arith.constant 0 : i32
    return %arg0, %c0_i32 : i32, i32
  }
  func.func @transform_1(%arg0: i32) -> (i32, i32) {
    %c0_i32 = arith.constant 0 : i32
    %c0_i32_0 = arith.constant 0 : i32
    return %arg0, %c0_i32 : i32, i32
  }
}

</mosaic_0001>

<bundles_post_ra>
// kernel: tpu_custom_call.1
= control target key start
LH: loop header
LB: loop body
LE: loop exit
PB: predicated region body
PF: predicated region fallthrough
CT: control target
= control target key end

     0   :  { %6 = vsyncpa [#allocation3], 0  ;;  %s152_s0 = inlined_call_operand.hbm [shape: f32[2,1024], index: 0, kind: input, shape index: {}]   ;;  %s153_s1 = inlined_call_operand.hbm [shape: f32[2,1024], index: 1, kind: output, shape index: {}]  }
   0x1   :  { %7 = vsyncpa [#allocation4], 0  ;;  %s116_s6 = smov [#allocation2]   ;;  %s68_s10 = scalar_lea.hbm %s152_s0, 256 }
   0x2   :  { %s14_s7 = sshll.u32 %s116_s6, 4  ;;  %p69_p0 = scmp.ne.s32.totalorder %s152_s0, %s68_s10  ;;  %s15_s7 = int_to_ptr.vmem [resolvable:$true] %s14_s7 }
   0x3   :  { %p72_p1 = scmp.lt.u32.totalorder %s68_s10, %s152_s0 }
   0x5   :  { %p74_p2 = pnand %p72_p1, %p69_p0 }
   0x7   :  { %77 = shalt.err (!%p74_p2)
}
   0x8   :  { %s78_s15 = scalar_lea.vmem %s15_s7, 256  ;;  %p83_p4 = scmp.lt.s32.totalorder %s15_s7, %s15_s7 }
   0x9   :  { %p79_p3 = scmp.ne.s32.totalorder %s15_s7, %s78_s15  ;;  %p84_p5 = scmp.lt.s32.totalorder %s78_s15, %s78_s15 }
   0xb   :  { %p85_p6 = por %p84_p5, %p83_p4 }
   0xd   :  { %p86_p7 = pnand %p85_p6, %p79_p3 }
   0xf   :  { %89 = shalt.err (!%p86_p7)
}
  0x10   :  { %17 = dma.hbm_to_vmem [thread:$0]  %s152_s0, 256, %s15_s7, [#allocation3]  }
  0x11   :  { %112 = dma.done.wait [#allocation3], 256  }
  0x12   :  { %113 = vsyncadd [#allocation3], 4294967040  ;;  %v21_v0 = vld [vmem:[#allocation2] sm:$0xff]  ;;  %v22_v1 = vld [vmem:[#allocation2 + $0x8] sm:$0xff]  ;;  %s117_s18 = smov [#allocation5]  }
  0x13   :  { %v56_v2 = vmul.f32 -1.442695, %v21_v0  ;;  %v57_v3 = vmul.f32 -1.442695, %v22_v1  ;;  %s47_s19 = sshll.u32 %s117_s18, 4  ;;  %s48_s19 = int_to_ptr.vmem [resolvable:$true] %s47_s19 }
  0x14   :  { %s90_s0 = scalar_lea.vmem %s48_s19, 256  ;;  %p95_p9 = scmp.lt.s32.totalorder %s48_s19, %s48_s19 }
  0x15   :  { %60 = vpow2.f32 %v56_v2  ;;  %p91_p8 = scmp.ne.s32.totalorder %s48_s19, %s90_s0  ;;  %p96_p10 = scmp.lt.s32.totalorder %s90_s0, %s90_s0 }
  0x16   :  { %62 = vpow2.f32 %v57_v3 }
  0x17   :  { %p97_p11 = por %p96_p10, %p95_p9 }
  0x19   :  { %p98_p12 = pnand %p97_p11, %p91_p8 }
  0x1f   :  { %v61_v4 = vpop.eup %60 }
  0x20   :  { %v63_v5 = vpop.eup %62  ;;  %v29_v6 = vadd.f32 1.0, %v61_v4 }
  0x21   :  { %v30_v7 = vadd.f32 1.0, %v63_v5 }
  0x22   :  { %64 = vrcp.f32 %v29_v6 }
  0x23   :  { %66 = vrcp.f32 %v30_v7 }
  0x2c   :  { %v65_v8 = vpop.eup %64 }
  0x2d   :  { %v67_v9 = vpop.eup %66  ;;  %v35_v10 = vmul.f32 2.0, %v65_v8 }
  0x2e   :  { %v36_v11 = vmul.f32 2.0, %v67_v9 }
  0x2f   :  { %v37_v12 = vadd.f32 -1.0, %v35_v10 }
  0x30   :  { %v38_v13 = vadd.f32 -1.0, %v36_v11 }
  0x31   :  { %39 = vst [vmem:[#allocation5] sm:$0xff] %v37_v12 }
  0x32   :  { %40 = vst [vmem:[#allocation5 + $0x8] sm:$0xff] %v38_v13 }
  0x33   :  { %101 = shalt.err (!%p98_p12)
}
  0x34   :  { %s102_s22 = scalar_lea.hbm %s153_s1, 256 }
  0x35   :  { %p103_p13 = scmp.ne.s32.totalorder %s153_s1, %s102_s22  ;;  %p106_p0 = scmp.lt.u32.totalorder %s102_s22, %s153_s1 }
  0x37   :  { %p108_p1 = pnand %p106_p0, %p103_p13 }
  0x39   :  { %111 = shalt.err (!%p108_p1)
}
  0x3a   :  { %50 = dma.vmem_to_hbm [thread:$0]  %s48_s19, 256, %s153_s1, [#allocation4]  }
  0x3b   :  { %114 = dma.done.wait [#allocation4], 256  }
  0x3c   :  { %115 = vsyncadd [#allocation4], 4294967040 }
  0x3d   :  { %54 = vsyncpa [#allocation3], 1 }
  0x3e   :  { %55 = vsyncpa [#allocation4], 1 }

</bundles_post_ra>
